<compile_context>
chip_gen: v5e
topology: v5e:2x2
jax: 0.10.0
libtpu: 0.0.40
codegen_flags: <defaults>
</compile_context>

<pallas_src>
import math

import jax
import jax.numpy as jnp
from jax.experimental import pallas as pl
from jax.experimental.pallas import tpu as pltpu

_HIDDEN = 10
_LANES = 128


def _mlp_kernel(params_ref, m_ref, g_ref, o_ref):
    # params layout (flat f32[41] in SMEM via scalar prefetch):
    #   [0:10)  w1[:, 0]  (momentum weights)
    #   [10:20) w1[:, 1]  (gradient weights)
    #   [20:30) b1
    #   [30:40) w2[0, :]
    #   [40]    b2
    #
    # Batch all scalar loads + broadcasts up front so the unrolled FMA/max
    # chain below is pure VALU work.
    w1m = [params_ref[j] for j in range(_HIDDEN)]
    w1g = [params_ref[_HIDDEN + j] for j in range(_HIDDEN)]
    b1 = [params_ref[2 * _HIDDEN + j] for j in range(_HIDDEN)]
    w2 = [params_ref[3 * _HIDDEN + j] for j in range(_HIDDEN)]
    b2 = params_ref[4 * _HIDDEN]

    m = m_ref[...]                      # (TR, 128) f32, lane-dense
    g = g_ref[...]                      # (TR, 128) f32

    # Unrolled 10-unit fused MLP; j = 0 term initializes the accumulator and
    # b2 is folded into that init (no separate zeros / final add).
    h = jnp.maximum(m * w1m[0] + g * w1g[0] + b1[0], 0.0)
    acc = h * w2[0] + b2
    for j in range(1, _HIDDEN):
        h = jnp.maximum(m * w1m[j] + g * w1g[j] + b1[j], 0.0)
        acc = acc + h * w2[j]
    o_ref[...] = acc.astype(o_ref.dtype)


def lr_learner_mlp_forward(momentum, new_gradients, w1, b1, w2, b2, *, tile_rows=2048):
    """momentum, new_gradients: (N,) f32. w1:(10,2) b1:(10,) w2:(1,10) b2:(1,).

    Returns (N, 1) f32, matching the PyTorch module's forward.
    """
    momentum = jnp.asarray(momentum, jnp.float32).reshape(-1)
    new_gradients = jnp.asarray(new_gradients, jnp.float32).reshape(-1)
    n = momentum.shape[0]

    # N -> lane-dense (rows, 128); rows sublane-aligned (pad <= 1023 elements).
    rows = pl.cdiv(n, _LANES)
    rows_p = ((rows + 7) // 8) * 8
    n_p = rows_p * _LANES

    def to_2d(v):
        if n_p != n:
            v = jnp.pad(v, (0, n_p - n))
        return v.reshape(rows_p, _LANES)

    m2 = to_2d(momentum)
    g2 = to_2d(new_gradients)

    # Row tile: multiple of 8 sublanes, at most `tile_rows`, never larger than
    # the array, and small enough that the grid has >= 2 blocks whenever
    # possible (so v7x can shard the "parallel" axis across both TensorCores).
    half = ((pl.cdiv(rows_p, 2) + 7) // 8) * 8
    tr = max(8, min(tile_rows, half, rows_p))
    grid = (pl.cdiv(rows_p, tr),)       # ragged last block handled by Pallas

    # Pack the 41 scalars into one flat array; delivered via scalar prefetch.
    w1 = jnp.asarray(w1, jnp.float32)                 # (10, 2)
    b1 = jnp.asarray(b1, jnp.float32).reshape(-1)     # (10,)
    w2 = jnp.asarray(w2, jnp.float32)                 # (1, 10)
    b2 = jnp.asarray(b2, jnp.float32).reshape(-1)     # (1,)
    params = jnp.concatenate([w1[:, 0], w1[:, 1], b1, w2[0, :], b2])   # (41,)

    tile_spec = pl.BlockSpec((tr, _LANES), lambda i, params: (i, 0))

    out2 = pl.pallas_call(
        _mlp_kernel,
        out_shape=jax.ShapeDtypeStruct((rows_p, _LANES), jnp.float32),
        grid_spec=pltpu.PrefetchScalarGridSpec(
            num_scalar_prefetch=1,                    # params -> SMEM
            grid=grid,
            in_specs=[tile_spec, tile_spec],          # momentum, gradient tiles
            out_specs=pl.BlockSpec((tr, _LANES), lambda i, params: (i, 0)),
        ),
        compiler_params=pltpu.CompilerParams(
            dimension_semantics=("parallel",),
            vmem_limit_bytes=32 << 20,                # safe on v5e/v6e/v7x; usage ~6 MiB at tr=2048
        ),
    )(params, m2, g2)

    # Restore the module's (N, 1) output shape (drop sublane/lane padding).
    # TODO(synk): if the caller accepts a flat (N,) or (rows,128) output, this
    # slice+reshape HBM copy can be dropped.
    return out2.reshape(-1)[:n].reshape(n, 1)


def init_params(key, input_size=2, output_size=1):
    """Deterministic xavier_uniform_(gain=0.02) init, biases zero (matches module)."""
    k1, k2 = jax.random.split(key)

    def xavier_uniform(k, shape, gain):
        fan_out, fan_in = shape          # torch: (out_features, in_features)
        bound = gain * math.sqrt(6.0 / (fan_in + fan_out))
        return jax.random.uniform(k, shape, jnp.float32, -bound, bound)

    w1 = xavier_uniform(k1, (10, input_size), 0.02)
    b1 = jnp.zeros((10,), jnp.float32)
    w2 = xavier_uniform(k2, (output_size, 10), 0.02)
    b2 = jnp.zeros((output_size,), jnp.float32)
    return w1, b1, w2, b2


def reference_forward(momentum, new_gradients, w1, b1, w2, b2):
    x = jnp.stack((momentum, new_gradients), axis=1)
    h = jnp.maximum(x @ w1.T + b1, 0.0)
    return h @ w2.T + b2


if __name__ == "__main__":
    key = jax.random.PRNGKey(0)
    kp, km, kg = jax.random.split(key, 3)

    w1, b1, w2, b2 = init_params(kp)

    # Small case (module-scale): N = 8  -> single 8x128 block.
    N = 8
    momentum = jax.random.normal(km, (N,), jnp.float32)
    new_gradients = jax.random.normal(kg, (N,), jnp.float32)

    out = lr_learner_mlp_forward(momentum, new_gradients, w1, b1, w2, b2)
    out = jax.block_until_ready(out)
    ref = reference_forward(momentum, new_gradients, w1, b1, w2, b2)
    assert out.shape == (N, 1)
    assert jnp.allclose(out, ref, atol=1e-5, rtol=1e-5)

    # Non-aligned case: exercises multi-block grid + ragged last block + padding path.
    N2 = 5001
    km2, kg2 = jax.random.split(kg)
    momentum2 = jax.random.normal(km2, (N2,), jnp.float32)
    new_gradients2 = jax.random.normal(kg2, (N2,), jnp.float32)

    out2 = lr_learner_mlp_forward(momentum2, new_gradients2, w1, b1, w2, b2)
    out2 = jax.block_until_ready(out2)
    ref2 = reference_forward(momentum2, new_gradients2, w1, b1, w2, b2)
    assert out2.shape == (N2, 1)
    assert jnp.allclose(out2, ref2, atol=1e-5, rtol=1e-5)

    print("KERNEL_OK")
</pallas_src>

<mosaic_0001>
module attributes {stable_mosaic.version = 11 : i64} {
  func.func @_mlp_kernel(%arg0: i32, %arg1: memref<41xf32, #tpu.memory_space<smem>>, %arg2: memref<8x128xf32, #tpu.memory_space<vmem>>, %arg3: memref<8x128xf32, #tpu.memory_space<vmem>>, %arg4: memref<8x128xf32, #tpu.memory_space<vmem>>) attributes {dimension_semantics = [#tpu.dimension_semantics<parallel>], iteration_bounds = array<i64: 1>, scalar_prefetch = 1 : i64, scratch_operands = 0 : i64, tpu.core_type = #tpu.core_type<tc>, window_params = [{transform_indices = @transform_0, window_bounds = array<i64: 8, 128>}, {transform_indices = @transform_1, window_bounds = array<i64: 8, 128>}, {transform_indices = @transform_2, window_bounds = array<i64: 8, 128>}]} {
    %c0 = arith.constant 0 : index
    %0 = memref.load %arg1[%c0] : memref<41xf32, #tpu.memory_space<smem>>
    %c1 = arith.constant 1 : index
    %1 = memref.load %arg1[%c1] : memref<41xf32, #tpu.memory_space<smem>>
    %c2 = arith.constant 2 : index
    %2 = memref.load %arg1[%c2] : memref<41xf32, #tpu.memory_space<smem>>
    %c3 = arith.constant 3 : index
    %3 = memref.load %arg1[%c3] : memref<41xf32, #tpu.memory_space<smem>>
    %c4 = arith.constant 4 : index
    %4 = memref.load %arg1[%c4] : memref<41xf32, #tpu.memory_space<smem>>
    %c5 = arith.constant 5 : index
    %5 = memref.load %arg1[%c5] : memref<41xf32, #tpu.memory_space<smem>>
    %c6 = arith.constant 6 : index
    %6 = memref.load %arg1[%c6] : memref<41xf32, #tpu.memory_space<smem>>
    %c7 = arith.constant 7 : index
    %7 = memref.load %arg1[%c7] : memref<41xf32, #tpu.memory_space<smem>>
    %c8 = arith.constant 8 : index
    %8 = memref.load %arg1[%c8] : memref<41xf32, #tpu.memory_space<smem>>
    %c9 = arith.constant 9 : index
    %9 = memref.load %arg1[%c9] : memref<41xf32, #tpu.memory_space<smem>>
    %c10 = arith.constant 10 : index
    %10 = memref.load %arg1[%c10] : memref<41xf32, #tpu.memory_space<smem>>
    %c11 = arith.constant 11 : index
    %11 = memref.load %arg1[%c11] : memref<41xf32, #tpu.memory_space<smem>>
    %c12 = arith.constant 12 : index
    %12 = memref.load %arg1[%c12] : memref<41xf32, #tpu.memory_space<smem>>
    %c13 = arith.constant 13 : index
    %13 = memref.load %arg1[%c13] : memref<41xf32, #tpu.memory_space<smem>>
    %c14 = arith.constant 14 : index
    %14 = memref.load %arg1[%c14] : memref<41xf32, #tpu.memory_space<smem>>
    %c15 = arith.constant 15 : index
    %15 = memref.load %arg1[%c15] : memref<41xf32, #tpu.memory_space<smem>>
    %c16 = arith.constant 16 : index
    %16 = memref.load %arg1[%c16] : memref<41xf32, #tpu.memory_space<smem>>
    %c17 = arith.constant 17 : index
    %17 = memref.load %arg1[%c17] : memref<41xf32, #tpu.memory_space<smem>>
    %c18 = arith.constant 18 : index
    %18 = memref.load %arg1[%c18] : memref<41xf32, #tpu.memory_space<smem>>
    %c19 = arith.constant 19 : index
    %19 = memref.load %arg1[%c19] : memref<41xf32, #tpu.memory_space<smem>>
    %c20 = arith.constant 20 : index
    %20 = memref.load %arg1[%c20] : memref<41xf32, #tpu.memory_space<smem>>
    %c21 = arith.constant 21 : index
    %21 = memref.load %arg1[%c21] : memref<41xf32, #tpu.memory_space<smem>>
    %c22 = arith.constant 22 : index
    %22 = memref.load %arg1[%c22] : memref<41xf32, #tpu.memory_space<smem>>
    %c23 = arith.constant 23 : index
    %23 = memref.load %arg1[%c23] : memref<41xf32, #tpu.memory_space<smem>>
    %c24 = arith.constant 24 : index
    %24 = memref.load %arg1[%c24] : memref<41xf32, #tpu.memory_space<smem>>
    %c25 = arith.constant 25 : index
    %25 = memref.load %arg1[%c25] : memref<41xf32, #tpu.memory_space<smem>>
    %c26 = arith.constant 26 : index
    %26 = memref.load %arg1[%c26] : memref<41xf32, #tpu.memory_space<smem>>
    %c27 = arith.constant 27 : index
    %27 = memref.load %arg1[%c27] : memref<41xf32, #tpu.memory_space<smem>>
    %c28 = arith.constant 28 : index
    %28 = memref.load %arg1[%c28] : memref<41xf32, #tpu.memory_space<smem>>
    %c29 = arith.constant 29 : index
    %29 = memref.load %arg1[%c29] : memref<41xf32, #tpu.memory_space<smem>>
    %c30 = arith.constant 30 : index
    %30 = memref.load %arg1[%c30] : memref<41xf32, #tpu.memory_space<smem>>
    %c31 = arith.constant 31 : index
    %31 = memref.load %arg1[%c31] : memref<41xf32, #tpu.memory_space<smem>>
    %c32 = arith.constant 32 : index
    %32 = memref.load %arg1[%c32] : memref<41xf32, #tpu.memory_space<smem>>
    %c33 = arith.constant 33 : index
    %33 = memref.load %arg1[%c33] : memref<41xf32, #tpu.memory_space<smem>>
    %c34 = arith.constant 34 : index
    %34 = memref.load %arg1[%c34] : memref<41xf32, #tpu.memory_space<smem>>
    %c35 = arith.constant 35 : index
    %35 = memref.load %arg1[%c35] : memref<41xf32, #tpu.memory_space<smem>>
    %c36 = arith.constant 36 : index
    %36 = memref.load %arg1[%c36] : memref<41xf32, #tpu.memory_space<smem>>
    %c37 = arith.constant 37 : index
    %37 = memref.load %arg1[%c37] : memref<41xf32, #tpu.memory_space<smem>>
    %c38 = arith.constant 38 : index
    %38 = memref.load %arg1[%c38] : memref<41xf32, #tpu.memory_space<smem>>
    %c39 = arith.constant 39 : index
    %39 = memref.load %arg1[%c39] : memref<41xf32, #tpu.memory_space<smem>>
    %c40 = arith.constant 40 : index
    %40 = memref.load %arg1[%c40] : memref<41xf32, #tpu.memory_space<smem>>
    %c0_0 = arith.constant 0 : index
    %c0_1 = arith.constant 0 : index
    %41 = vector.load %arg2[%c0_0, %c0_1] : memref<8x128xf32, #tpu.memory_space<vmem>>, vector<8x128xf32>
    %c0_2 = arith.constant 0 : index
    %c0_3 = arith.constant 0 : index
    %42 = vector.load %arg3[%c0_2, %c0_3] : memref<8x128xf32, #tpu.memory_space<vmem>>, vector<8x128xf32>
    %43 = vector.broadcast %0 : f32 to vector<8x128xf32>
    %44 = arith.mulf %41, %43 : vector<8x128xf32>
    %45 = vector.broadcast %10 : f32 to vector<8x128xf32>
    %46 = arith.mulf %42, %45 : vector<8x128xf32>
    %47 = arith.addf %44, %46 : vector<8x128xf32>
    %48 = vector.broadcast %20 : f32 to vector<8x128xf32>
    %49 = arith.addf %47, %48 : vector<8x128xf32>
    %cst = arith.constant 0.000000e+00 : f32
    %50 = vector.broadcast %cst : f32 to vector<8x128xf32>
    %51 = arith.maximumf %49, %50 : vector<8x128xf32>
    %52 = vector.broadcast %30 : f32 to vector<8x128xf32>
    %53 = arith.mulf %51, %52 : vector<8x128xf32>
    %54 = vector.broadcast %40 : f32 to vector<8x128xf32>
    %55 = arith.addf %53, %54 : vector<8x128xf32>
    %56 = vector.broadcast %1 : f32 to vector<8x128xf32>
    %57 = arith.mulf %41, %56 : vector<8x128xf32>
    %58 = vector.broadcast %11 : f32 to vector<8x128xf32>
    %59 = arith.mulf %42, %58 : vector<8x128xf32>
    %60 = arith.addf %57, %59 : vector<8x128xf32>
    %61 = vector.broadcast %21 : f32 to vector<8x128xf32>
    %62 = arith.addf %60, %61 : vector<8x128xf32>
    %cst_4 = arith.constant 0.000000e+00 : f32
    %63 = vector.broadcast %cst_4 : f32 to vector<8x128xf32>
    %64 = arith.maximumf %62, %63 : vector<8x128xf32>
    %65 = vector.broadcast %31 : f32 to vector<8x128xf32>
    %66 = arith.mulf %64, %65 : vector<8x128xf32>
    %67 = arith.addf %55, %66 : vector<8x128xf32>
    %68 = vector.broadcast %2 : f32 to vector<8x128xf32>
    %69 = arith.mulf %41, %68 : vector<8x128xf32>
    %70 = vector.broadcast %12 : f32 to vector<8x128xf32>
    %71 = arith.mulf %42, %70 : vector<8x128xf32>
    %72 = arith.addf %69, %71 : vector<8x128xf32>
    %73 = vector.broadcast %22 : f32 to vector<8x128xf32>
    %74 = arith.addf %72, %73 : vector<8x128xf32>
    %cst_5 = arith.constant 0.000000e+00 : f32
    %75 = vector.broadcast %cst_5 : f32 to vector<8x128xf32>
    %76 = arith.maximumf %74, %75 : vector<8x128xf32>
    %77 = vector.broadcast %32 : f32 to vector<8x128xf32>
    %78 = arith.mulf %76, %77 : vector<8x128xf32>
    %79 = arith.addf %67, %78 : vector<8x128xf32>
    %80 = vector.broadcast %3 : f32 to vector<8x128xf32>
    %81 = arith.mulf %41, %80 : vector<8x128xf32>
    %82 = vector.broadcast %13 : f32 to vector<8x128xf32>
    %83 = arith.mulf %42, %82 : vector<8x128xf32>
    %84 = arith.addf %81, %83 : vector<8x128xf32>
    %85 = vector.broadcast %23 : f32 to vector<8x128xf32>
    %86 = arith.addf %84, %85 : vector<8x128xf32>
    %cst_6 = arith.constant 0.000000e+00 : f32
    %87 = vector.broadcast %cst_6 : f32 to vector<8x128xf32>
    %88 = arith.maximumf %86, %87 : vector<8x128xf32>
    %89 = vector.broadcast %33 : f32 to vector<8x128xf32>
    %90 = arith.mulf %88, %89 : vector<8x128xf32>
    %91 = arith.addf %79, %90 : vector<8x128xf32>
    %92 = vector.broadcast %4 : f32 to vector<8x128xf32>
    %93 = arith.mulf %41, %92 : vector<8x128xf32>
    %94 = vector.broadcast %14 : f32 to vector<8x128xf32>
    %95 = arith.mulf %42, %94 : vector<8x128xf32>
    %96 = arith.addf %93, %95 : vector<8x128xf32>
    %97 = vector.broadcast %24 : f32 to vector<8x128xf32>
    %98 = arith.addf %96, %97 : vector<8x128xf32>
    %cst_7 = arith.constant 0.000000e+00 : f32
    %99 = vector.broadcast %cst_7 : f32 to vector<8x128xf32>
    %100 = arith.maximumf %98, %99 : vector<8x128xf32>
    %101 = vector.broadcast %34 : f32 to vector<8x128xf32>
    %102 = arith.mulf %100, %101 : vector<8x128xf32>
    %103 = arith.addf %91, %102 : vector<8x128xf32>
    %104 = vector.broadcast %5 : f32 to vector<8x128xf32>
    %105 = arith.mulf %41, %104 : vector<8x128xf32>
    %106 = vector.broadcast %15 : f32 to vector<8x128xf32>
    %107 = arith.mulf %42, %106 : vector<8x128xf32>
    %108 = arith.addf %105, %107 : vector<8x128xf32>
    %109 = vector.broadcast %25 : f32 to vector<8x128xf32>
    %110 = arith.addf %108, %109 : vector<8x128xf32>
    %cst_8 = arith.constant 0.000000e+00 : f32
    %111 = vector.broadcast %cst_8 : f32 to vector<8x128xf32>
    %112 = arith.maximumf %110, %111 : vector<8x128xf32>
    %113 = vector.broadcast %35 : f32 to vector<8x128xf32>
    %114 = arith.mulf %112, %113 : vector<8x128xf32>
    %115 = arith.addf %103, %114 : vector<8x128xf32>
    %116 = vector.broadcast %6 : f32 to vector<8x128xf32>
    %117 = arith.mulf %41, %116 : vector<8x128xf32>
    %118 = vector.broadcast %16 : f32 to vector<8x128xf32>
    %119 = arith.mulf %42, %118 : vector<8x128xf32>
    %120 = arith.addf %117, %119 : vector<8x128xf32>
    %121 = vector.broadcast %26 : f32 to vector<8x128xf32>
    %122 = arith.addf %120, %121 : vector<8x128xf32>
    %cst_9 = arith.constant 0.000000e+00 : f32
    %123 = vector.broadcast %cst_9 : f32 to vector<8x128xf32>
    %124 = arith.maximumf %122, %123 : vector<8x128xf32>
    %125 = vector.broadcast %36 : f32 to vector<8x128xf32>
    %126 = arith.mulf %124, %125 : vector<8x128xf32>
    %127 = arith.addf %115, %126 : vector<8x128xf32>
    %128 = vector.broadcast %7 : f32 to vector<8x128xf32>
    %129 = arith.mulf %41, %128 : vector<8x128xf32>
    %130 = vector.broadcast %17 : f32 to vector<8x128xf32>
    %131 = arith.mulf %42, %130 : vector<8x128xf32>
    %132 = arith.addf %129, %131 : vector<8x128xf32>
    %133 = vector.broadcast %27 : f32 to vector<8x128xf32>
    %134 = arith.addf %132, %133 : vector<8x128xf32>
    %cst_10 = arith.constant 0.000000e+00 : f32
    %135 = vector.broadcast %cst_10 : f32 to vector<8x128xf32>
    %136 = arith.maximumf %134, %135 : vector<8x128xf32>
    %137 = vector.broadcast %37 : f32 to vector<8x128xf32>
    %138 = arith.mulf %136, %137 : vector<8x128xf32>
    %139 = arith.addf %127, %138 : vector<8x128xf32>
    %140 = vector.broadcast %8 : f32 to vector<8x128xf32>
    %141 = arith.mulf %41, %140 : vector<8x128xf32>
    %142 = vector.broadcast %18 : f32 to vector<8x128xf32>
    %143 = arith.mulf %42, %142 : vector<8x128xf32>
    %144 = arith.addf %141, %143 : vector<8x128xf32>
    %145 = vector.broadcast %28 : f32 to vector<8x128xf32>
    %146 = arith.addf %144, %145 : vector<8x128xf32>
    %cst_11 = arith.constant 0.000000e+00 : f32
    %147 = vector.broadcast %cst_11 : f32 to vector<8x128xf32>
    %148 = arith.maximumf %146, %147 : vector<8x128xf32>
    %149 = vector.broadcast %38 : f32 to vector<8x128xf32>
    %150 = arith.mulf %148, %149 : vector<8x128xf32>
    %151 = arith.addf %139, %150 : vector<8x128xf32>
    %152 = vector.broadcast %9 : f32 to vector<8x128xf32>
    %153 = arith.mulf %41, %152 : vector<8x128xf32>
    %154 = vector.broadcast %19 : f32 to vector<8x128xf32>
    %155 = arith.mulf %42, %154 : vector<8x128xf32>
    %156 = arith.addf %153, %155 : vector<8x128xf32>
    %157 = vector.broadcast %29 : f32 to vector<8x128xf32>
    %158 = arith.addf %156, %157 : vector<8x128xf32>
    %cst_12 = arith.constant 0.000000e+00 : f32
    %159 = vector.broadcast %cst_12 : f32 to vector<8x128xf32>
    %160 = arith.maximumf %158, %159 : vector<8x128xf32>
    %161 = vector.broadcast %39 : f32 to vector<8x128xf32>
    %162 = arith.mulf %160, %161 : vector<8x128xf32>
    %163 = arith.addf %151, %162 : vector<8x128xf32>
    %c0_13 = arith.constant 0 : index
    %c0_14 = arith.constant 0 : index
    %164 = vector.load %arg4[%c0_13, %c0_14] : memref<8x128xf32, #tpu.memory_space<vmem>>, vector<8x128xf32>
    tpu.vector_store %arg4[%c0_13, %c0_14], %163 {strides = array<i32>} : memref<8x128xf32, #tpu.memory_space<vmem>>, vector<8x128xf32>,
    return
  }
  func.func @transform_0(%arg0: i32, %arg1: memref<41xf32, #tpu.memory_space<smem>>) -> (i32, i32) {
    %c0_i32 = arith.constant 0 : i32
    %c0_i32_0 = arith.constant 0 : i32
    return %arg0, %c0_i32 : i32, i32
  }
  func.func @transform_1(%arg0: i32, %arg1: memref<41xf32, #tpu.memory_space<smem>>) -> (i32, i32) {
    %c0_i32 = arith.constant 0 : i32
    %c0_i32_0 = arith.constant 0 : i32
    return %arg0, %c0_i32 : i32, i32
  }
  func.func @transform_2(%arg0: i32, %arg1: memref<41xf32, #tpu.memory_space<smem>>) -> (i32, i32) {
    %c0_i32 = arith.constant 0 : i32
    %c0_i32_0 = arith.constant 0 : i32
    return %arg0, %c0_i32 : i32, i32
  }
}

</mosaic_0001>

<bundles_post_ra>
// kernel: tpu_custom_call.1
= control target key start
LH: loop header
LB: loop body
LE: loop exit
PB: predicated region body
PF: predicated region fallthrough
CT: control target
= control target key end

     0   :  { %s358_s15 = smov [#allocation3]   ;;  %s526_s0 = inlined_call_operand.hbm [shape: f32[41], index: 0, kind: input, shape index: {}]   ;;  %s527_s1 = inlined_call_operand.hbm [shape: f32[8,128], index: 1, kind: input, shape index: {}]   ;;  %s528_s2 = inlined_call_operand.hbm [shape: f32[8,128], index: 2, kind: input, shape index: {}]   ;;  %s529_s3 = inlined_call_operand.hbm [shape: f32[8,128], index: 3, kind: output, shape index: {}]  }
   0x1   :  { %s9_s14 = sshll.u32 %s526_s0, 4  ;;  %s10_s14 = int_to_ptr.hbm [resolvable:$true] %s9_s14 }
   0x2   :  { %12 = dma.hbm_to_smem %s10_s14, 16, %s358_s15, [#allocation2] }
   0x3   :  { %350 = dma.done.wait [#allocation2], 16 }
   0x4   :  { %351 = vsyncadd [#allocation2], 4294967280 }
   0x5   :  { %15 = sfence }
   0x6   :  { %16 = vsyncpa [#allocation5], 0 }
   0x7   :  { %17 = vsyncpa [#allocation8], 0 }
   0x8   :  { %18 = vsyncpa [#allocation6], 0  ;;  %s24_s18 = sshll.u32 %s527_s1, 4  ;;  %s359_s19 = smov [#allocation4]   ;;  %s25_s18 = int_to_ptr.hbm [resolvable:$true] %s24_s18 }
   0x9   :  { %s26_s20 = sshll.u32 %s359_s19, 4  ;;  %s35_s0 = sshll.u32 %s528_s2, 4  ;;  %s27_s20 = int_to_ptr.vmem [resolvable:$true] %s26_s20  ;;  %s36_s0 = int_to_ptr.hbm [resolvable:$true] %s35_s0 }
   0xa   :  { %29 = dma.hbm_to_vmem [thread:$0]  %s25_s18, 128, %s27_s20, [#allocation5]  }
   0xb   :  { %s360_s23 = smov [#allocation7]  }
   0xc   :  { %s37_s24 = sshll.u32 %s360_s23, 4  ;;  %s38_s24 = int_to_ptr.vmem [resolvable:$true] %s37_s24 }
   0xd   :  { %40 = dma.hbm_to_vmem [thread:$0]  %s36_s0, 128, %s38_s24, [#allocation8]  }
   0xe   :  { %352 = dma.done.wait [#allocation5], 128  }
   0xf   :  { %353 = vsyncadd [#allocation5], 4294967168 }
  0x10   :  { %354 = dma.done.wait [#allocation8], 128  }
  0x11   :  { %355 = vsyncadd [#allocation8], 4294967168  ;;  %s49_s25 = sld [smem:[#allocation3]]  ;;  %v423_v0 = vld [vmem:[#allocation4] sm:$0xff]  ;;  %v425_v1 = vld [vmem:[#allocation7] sm:$0xff] }
  0x12   :  { %s391_s1 = sld [smem:[#allocation3 + $0x1]] }
  0x13   :  { %s393_s26 = sld [smem:[#allocation3 + $0x2]] }
  0x14   :  { %s395_s27 = sld [smem:[#allocation3 + $0x3]] }
  0x15   :  { %s397_s28 = sld [smem:[#allocation3 + $0x4]] }
  0x16   :  { %s399_s2 = sld [smem:[#allocation3 + $0x5]] }
  0x17   :  { %s401_s29 = sld [smem:[#allocation3 + $0x6]]  ;;  %v92_v2 = vstv %s49_s25 }
  0x18   :  { %s403_s30 = sld [smem:[#allocation3 + $0x7]]  ;;  %v104_v4 = vstv %s391_s1  ;;  %v93_v6 = vmul.f32 %v92_v2, %v423_v0 }
  0x19   :  { %s405_s4 = sld [smem:[#allocation3 + $0x8]]  ;;  %v115_v8 = vstv %s393_s26  ;;  %v105_v10 = vmul.f32 %v104_v4, %v423_v0 }
  0x1a   :  { %s407_s5 = sld [smem:[#allocation3 + $0x9]]  ;;  %v126_v12 = vstv %s395_s27  ;;  %v116_v16 = vmul.f32 %v115_v8, %v423_v0 }
  0x1b   :  { %s231_s6 = sld [smem:[#allocation3 + $0xa]]  ;;  %v137_v13 = vstv %s397_s28  ;;  %v127_v20 = vmul.f32 %v126_v12, %v423_v0 }
  0x1c   :  { %s232_s7 = sld [smem:[#allocation3 + $0xb]]  ;;  %v138_v21 = vmul.f32 %v137_v13, %v423_v0  ;;  %v148_v24 = vstv %s399_s2 }
  0x1d   :  { %s409_s8 = sld [smem:[#allocation3 + $0xc]]  ;;  %v159_v28 = vstv %s401_s29  ;;  %v149_v33 = vmul.f32 %v148_v24, %v423_v0 }
  0x1e   :  { %s411_s9 = sld [smem:[#allocation3 + $0xd]]  ;;  %v170_v29 = vstv %s403_s30  ;;  %v160_v38 = vmul.f32 %v159_v28, %v423_v0 }
  0x1f   :  { %s413_s10 = sld [smem:[#allocation3 + $0xe]]  ;;  %v171_v39 = vmul.f32 %v170_v29, %v423_v0  ;;  %v181_v43 = vstv %s405_s4 }
  0x20   :  { %s415_s11 = sld [smem:[#allocation3 + $0xf]]  ;;  %v192_v51 = vstv %s407_s5  ;;  %v182_v58 = vmul.f32 %v181_v43, %v423_v0 }
  0x21   :  { %s417_s12 = sld [smem:[#allocation3 + $0x10]]  ;;  %v94_v3 = vstv %s231_s6  ;;  %v193_v4 = vmul.f32 %v192_v51, %v423_v0 }
  0x22   :  { %s419_s13 = sld [smem:[#allocation3 + $0x11]]  ;;  %v106_v5 = vstv %s232_s7  ;;  %v95_v7 = vmul.f32 %v94_v3, %v425_v1  ;;  %s361_s7 = smov [#allocation9]  }
  0x23   :  { %s421_s14 = sld [smem:[#allocation3 + $0x14]]  ;;  %v117_v9 = vstv %s409_s8  ;;  %v107_v11 = vmul.f32 %v106_v5, %v425_v1  ;;  %s209_s8 = sshll.u32 %s361_s7, 4  ;;  %s210_s8 = int_to_ptr.vmem [resolvable:$true] %s209_s8 }
  0x24   :  { %s427_s15 = sld [smem:[#allocation3 + $0x12]]  ;;  %v128_v14 = vstv %s411_s9  ;;  %v96_v15 = vadd.f32 %v95_v7, %v93_v6  ;;  %v118_v17 = vmul.f32 %v117_v9, %v425_v1 }
  0x25   :  { %s429_s16 = sld [smem:[#allocation3 + $0x15]]  ;;  %v139_v18 = vstv %s413_s10  ;;  %v108_v22 = vadd.f32 %v107_v11, %v105_v10  ;;  %v129_v23 = vmul.f32 %v128_v14, %v425_v1 }
  0x26   :  { %s432_s17 = sld [smem:[#allocation3 + $0x13]]  ;;  %v150_v25 = vstv %s415_s11  ;;  %v140_v27 = vmul.f32 %v139_v18, %v425_v1  ;;  %v119_v31 = vadd.f32 %v118_v17, %v116_v16  ;;  %s211_s11 = sshll.u32 %s529_s3, 4  ;;  %s212_s11 = int_to_ptr.hbm [resolvable:$true] %s211_s11 }
  0x27   :  { %s436_s18 = sld [smem:[#allocation3 + $0x16]]  ;;  %v151_v34 = vmul.f32 %v150_v25, %v425_v1  ;;  %v161_v35 = vstv %s417_s12  ;;  %v130_v37 = vadd.f32 %v129_v23, %v127_v20 }
  0x28   :  { %s440_s19 = sld [smem:[#allocation3 + $0x17]]  ;;  %v141_v41 = vadd.f32 %v140_v27, %v138_v21  ;;  %v172_v42 = vstv %s419_s13  ;;  %v162_v46 = vmul.f32 %v161_v35, %v425_v1 }
  0x29   :  { %s446_s20 = sld [smem:[#allocation3 + $0x18]]  ;;  %v97_v19 = vstv %s421_s14  ;;  %v152_v50 = vadd.f32 %v151_v34, %v149_v33  ;;  %v173_v54 = vmul.f32 %v172_v42, %v425_v1 }
  0x2a   :  { %s449_s21 = sld [smem:[#allocation3 + $0x19]]  ;;  %v98_v30 = vadd.f32 %v97_v19, %v96_v15  ;;  %v183_v47 = vstv %s427_s15  ;;  %v163_v63 = vadd.f32 %v162_v46, %v160_v38 }
  0x2b   :  { %s454_s22 = sld [smem:[#allocation3 + $0x1e]]  ;;  %v109_v26 = vstv %s429_s16  ;;  %v184_v59 = vmul.f32 %v183_v47, %v425_v1  ;;  %v174_v9 = vadd.f32 %v173_v54, %v171_v39 }
  0x2c   :  { %s459_s0 = sld [smem:[#allocation3 + $0x1a]]  ;;  %v110_v36 = vadd.f32 %v109_v26, %v108_v22  ;;  %v99_v44 = vmax.f32 %v98_v30, 0.0  ;;  %v194_v55 = vstv %s432_s17 }
  0x2d   :  { %s464_s23 = sld [smem:[#allocation3 + $0x1f]]  ;;  %v120_v32 = vstv %s436_s18  ;;  %v195_v5 = vmul.f32 %v194_v55, %v425_v1  ;;  %v185_v13 = vadd.f32 %v184_v59, %v182_v58 }
  0x2e   :  { %s470_s24 = sld [smem:[#allocation3 + $0x1b]]  ;;  %v131_v40 = vstv %s440_s19  ;;  %v121_v45 = vadd.f32 %v120_v32, %v119_v31  ;;  %v111_v52 = vmax.f32 %v110_v36, 0.0 }
  0x2f   :  { %s472_s25 = sld [smem:[#allocation3 + $0x20]]  ;;  %v142_v49 = vstv %s446_s20  ;;  %v132_v53 = vadd.f32 %v131_v40, %v130_v37  ;;  %v196_v18 = vadd.f32 %v195_v5, %v193_v4 }
  0x30   :  { %s478_s1 = sld [smem:[#allocation3 + $0x1c]]  ;;  %v153_v57 = vstv %s449_s21  ;;  %v122_v61 = vmax.f32 %v121_v45, 0.0  ;;  %v143_v62 = vadd.f32 %v142_v49, %v141_v41 }
  0x31   :  { %s482_s26 = sld [smem:[#allocation3 + $0x21]]  ;;  %v100_v48 = vstv %s454_s22  ;;  %v133_v7 = vmax.f32 %v132_v53, 0.0  ;;  %v154_v8 = vadd.f32 %v153_v57, %v152_v50 }
  0x32   :  { %s487_s27 = sld [smem:[#allocation3 + $0x22]]  ;;  %v101_v60 = vmul.f32 %v100_v48, %v99_v44  ;;  %v164_v3 = vstv %s459_s0  ;;  %v144_v16 = vmax.f32 %v143_v62, 0.0 }
  0x33   :  { %s491_s28 = sld [smem:[#allocation3 + $0x28]]  ;;  %v112_v56 = vstv %s464_s23  ;;  %v165_v0 = vadd.f32 %v164_v3, %v163_v63  ;;  %v155_v21 = vmax.f32 %v154_v8, 0.0 }
  0x34   :  { %s496_s2 = sld [smem:[#allocation3 + $0x1d]]  ;;  %v113_v6 = vmul.f32 %v112_v56, %v111_v52  ;;  %v175_v12 = vstv %s470_s24 }
  0x35   :  { %s500_s29 = sld [smem:[#allocation3 + $0x23]]  ;;  %v123_v2 = vstv %s472_s25  ;;  %v176_v22 = vadd.f32 %v175_v12, %v174_v9  ;;  %v166_v27 = vmax.f32 %v165_v0, 0.0 }
  0x36   :  { %s506_s30 = sld [smem:[#allocation3 + $0x24]]  ;;  %v124_v15 = vmul.f32 %v123_v2, %v122_v61  ;;  %v186_v17 = vstv %s478_s1 }
  0x37   :  { %s512_s4 = sld [smem:[#allocation3 + $0x25]]  ;;  %v134_v11 = vstv %s482_s26  ;;  %v187_v28 = vadd.f32 %v186_v17, %v185_v13  ;;  %v177_v32 = vmax.f32 %v176_v22, 0.0 }
  0x38   :  { %s259_s5 = sld [smem:[#allocation3 + $0x26]]  ;;  %v145_v1 = vstv %s487_s27  ;;  %v135_v20 = vmul.f32 %v134_v11, %v133_v7 }
  0x39   :  { %v102_v10 = vstv %s491_s28  ;;  %s260_s6 = sld [smem:[#allocation3 + $0x27]]  ;;  %v146_v26 = vmul.f32 %v145_v1, %v144_v16  ;;  %v188_v37 = vmax.f32 %v187_v28, 0.0 }
  0x3a   :  { %v103_v14 = vadd.f32 %v102_v10, %v101_v60  ;;  %v197_v24 = vstv %s496_s2 }
  0x3b   :  { %v156_v23 = vstv %s500_s29  ;;  %v198_v33 = vadd.f32 %v197_v24, %v196_v18 }
  0x3c   :  { %v114_v19 = vadd.f32 %v113_v6, %v103_v14  ;;  %v167_v29 = vstv %s506_s30  ;;  %v157_v31 = vmul.f32 %v156_v23, %v155_v21 }
  0x3d   :  { %v178_v34 = vstv %s512_s4  ;;  %v168_v36 = vmul.f32 %v167_v29, %v166_v27  ;;  %v199_v41 = vmax.f32 %v198_v33, 0.0 }
  0x3e   :  { %v125_v25 = vadd.f32 %v124_v15, %v114_v19  ;;  %v189_v38 = vstv %s259_s5  ;;  %v179_v40 = vmul.f32 %v178_v34, %v177_v32 }
  0x3f   :  { %v200_v42 = vstv %s260_s6  ;;  %v190_v44 = vmul.f32 %v189_v38, %v188_v37 }
  0x40   :  { %v136_v30 = vadd.f32 %v135_v20, %v125_v25  ;;  %v201_v46 = vmul.f32 %v200_v42, %v199_v41 }
  0x42   :  { %v147_v35 = vadd.f32 %v146_v26, %v136_v30 }
  0x44   :  { %v158_v39 = vadd.f32 %v157_v31, %v147_v35 }
  0x46   :  { %v169_v43 = vadd.f32 %v168_v36, %v158_v39 }
  0x48   :  { %v180_v45 = vadd.f32 %v179_v40, %v169_v43 }
  0x4a   :  { %v191_v47 = vadd.f32 %v190_v44, %v180_v45 }
  0x4c   :  { %v202_v48 = vadd.f32 %v201_v46, %v191_v47 }
  0x4e   :  { %203 = vst [vmem:[#allocation9] sm:$0xff] %v202_v48 }
  0x4f   :  { %214 = dma.vmem_to_hbm [thread:$0]  %s210_s8, 128, %s212_s11, [#allocation6]  }
  0x50   :  { %356 = dma.done.wait [#allocation6], 128  }
  0x51   :  { %357 = vsyncadd [#allocation6], 4294967168 }
  0x52   :  { %219 = vsyncpa [#allocation5], 1 }
  0x53   :  { %220 = vsyncpa [#allocation8], 1 }
  0x54   :  { %221 = vsyncpa [#allocation6], 1 }

</bundles_post_ra>
